<compile_context>
chip_gen: v7x
topology: tpu7x:2x2x1
jax: 0.10.0
libtpu: 0.0.40
codegen_flags: <defaults>
</compile_context>

<pallas_src>
import functools

import jax
import jax.numpy as jnp
import numpy as np
from jax.experimental import pallas as pl
from jax.experimental.pallas import tpu as pltpu


# --------------------------------------------------------------------------- #
# Device / VMEM helpers
# --------------------------------------------------------------------------- #
def _vmem_capacity_bytes():
    try:
        return int(pltpu.get_tpu_info().vmem_capacity_bytes)
    except Exception:
        return 64 * 1024 * 1024  # conservative fallback (v7x per-core VMEM)


def _num_tensorcores():
    """Best-effort TensorCores-per-device (2 on v7x-style megacore chips)."""
    try:
        info = pltpu.get_tpu_info()
        for attr in ("num_cores", "core_count", "num_tensorcores",
                     "tensorcores_per_chip", "num_cores_per_chip"):
            val = getattr(info, attr, None)
            if isinstance(val, int) and 1 <= val <= 8:
                return val
    except Exception:
        pass
    try:
        kind = (getattr(jax.devices()[0], "device_kind", "") or "").lower()
        if "v7" in kind:
            return 2
    except Exception:
        pass
    return 1


def _auto_row_tile(n, v, itemsize, cap, buffers):
    """Largest row tile whose peak VMEM footprint fits ~50% of capacity.

    Peak bytes per row ~= `buffers` pipelined native-dtype logits tiles plus
    ~3 f32-sized elementwise intermediates (upcast, exp result, iota/mask slack).
    """
    per_row = v * (buffers * itemsize + 12) + 1024
    tn = int(cap * 0.50) // per_row
    tn = max(16, min(8192, (tn // 16) * 16))   # multiple of 16 (bf16 sublane tile)
    if n >= 16:
        tn = min(tn, ((n + 15) // 16) * 16)    # don't tile far past the data
    return tn


def _vmem_limit_bytes(tn, v, itemsize, cap, buffers):
    needed = (buffers * tn * v * itemsize   # pipelined logits tiles (native dtype)
              + 3 * tn * v * 4              # f32 elementwise intermediates
              + buffers * tn * 512          # (tn,2) int32 ids blocks (lane-padded)
              + tn * 512                    # (tn,1) f32 accumulator (lane-padded)
              + (2 << 20))                  # outputs + compiler internal scratch
    return int(min(int(cap * 0.75), max(needed, 32 << 20)))


# --------------------------------------------------------------------------- #
# Kernel
# --------------------------------------------------------------------------- #
def _combine_loss_kernel(ids_ref, logits_ref, out_ref, acc_ref, *,
                         p, n_valid, tn, blocks_per_par, needs_mask):
    """One grid step processes a (tn, V) row-block of flattened logits.

    Grid is (n_par, blocks_per_par); axis 0 is 'parallel' (megacore sharding on
    multi-TC chips), axis 1 is the 'arbitrary' reduction axis.
    """
    j = pl.program_id(1)

    @pl.when(j == 0)
    def _():
        acc_ref[...] = jnp.zeros_like(acc_ref)

    x = logits_ref[...]                                      # (tn, V) native dtype
    ids = ids_ref[...]                                       # (tn, 2) int32
    tgt = ids[:, 1:2]                                        # (tn, 1) output_id

    # Row max and target gather stay in the *native* dtype: max never rounds and
    # the one-hot sum has exactly one nonzero per row, so bf16 here is exact
    # while packing 2 elems/lane on v6e/v7x (less VPU work).
    m_nat = jnp.max(x, axis=-1, keepdims=True)               # (tn, 1) native
    col = jax.lax.broadcasted_iota(jnp.int32, x.shape, 1)    # (tn, V) int32
    gathered = jnp.sum(jnp.where(col == tgt, x, 0),
                       axis=-1, keepdims=True)               # (tn, 1) native

    # Only the exp path is upcast to f32 (logsumexp accuracy).
    m = m_nat.astype(jnp.float32)                            # (tn, 1) f32
    e = jnp.exp(x.astype(jnp.float32) - m)                   # (tn, V) f32
    lse = jnp.log(jnp.sum(e, axis=-1, keepdims=True)) + m    # (tn, 1) f32
    nll = lse - gathered.astype(jnp.float32)                 # (tn, 1) f32

    # correct_mask * nll + p * error_mask * nll   (trace-time special case p == 1)
    if p == 1.0:
        wnll = nll
    else:
        inp = ids[:, 0:1]                                    # input_id
        w = jnp.where(inp == tgt, jnp.float32(1.0), jnp.float32(p))
        wnll = w * nll

    if needs_mask:
        # Boundary / padded blocks: zero out rows past the true N.  Uses the
        # *unclamped* logical row index, so fully-padded grid steps (block index
        # clamped in the index_map) contribute exactly zero.
        row0 = (pl.program_id(0) * blocks_per_par + j) * tn
        ridx = row0 + jax.lax.broadcasted_iota(jnp.int32, (tn, 1), 0)
        wnll = jnp.where(ridx < n_valid, wnll, jnp.float32(0.0))

    acc_ref[...] += wnll                                     # (tn, 1)

    @pl.when(j == pl.num_programs(1) - 1)
    def _():
        total = jnp.sum(acc_ref[...], axis=0, keepdims=True)  # (1, 1)
        out_ref[...] = jnp.broadcast_to(total, out_ref.shape)  # (1, 128)


# --------------------------------------------------------------------------- #
# Wrapper
# --------------------------------------------------------------------------- #
def combine_loss(logits, input_id, output_id, *, p=1.0, size_average=True,
                 tn=None, logits_buffers=2, force_n_par=None):
    """Pallas implementation of CombineLoss.forward.

    logits:    (B, S, V) float (f32 or bf16 — streamed in its native dtype)
    input_id:  (B, S)   int
    output_id: (B, S)   int
    returns scalar float32 loss.
    """
    b, s, v = logits.shape
    n = b * s
    itemsize = jnp.dtype(logits.dtype).itemsize
    cap = _vmem_capacity_bytes()
    buffers = max(2, int(logits_buffers))

    if tn is None:
        tn = _auto_row_tile(n, v, itemsize, cap, buffers)
    else:
        tn = max(16, (int(tn) // 16) * 16)
    vmem_limit = _vmem_limit_bytes(tn, v, itemsize, cap, buffers)

    logits2 = logits.reshape(n, v)  # keep native dtype (bf16 stays bf16 in HBM)
    ids = jnp.stack(
        [input_id.reshape(n).astype(jnp.int32),
         output_id.reshape(n).astype(jnp.int32)], axis=-1)               # (n, 2)

    total_blocks = pl.cdiv(n, tn)
    if force_n_par is not None:
        n_par = 1 if total_blocks < 2 else max(1, min(2, int(force_n_par)))
    else:
        cores = _num_tensorcores()
        # 2-way split whenever there are >= 2 TensorCores (v7x); single-TC chips
        # keep n_par = 1 so they don't pay for a padded block / second output.
        n_par = 2 if (cores >= 2 and total_blocks >= 2) else 1
    bpp = pl.cdiv(total_blocks, n_par)
    padded_blocks = n_par * bpp
    needs_mask = (padded_blocks * tn != n)
    pad_grid = padded_blocks != total_blocks
    last_blk = total_blocks - 1

    def idx_map(par, j):
        blk = par * bpp + j
        if pad_grid:
            blk = jnp.minimum(blk, last_blk)   # padded steps re-read the last block
        return (blk, 0)

    kernel = functools.partial(
        _combine_loss_kernel, p=float(p), n_valid=n, tn=tn,
        blocks_per_par=bpp, needs_mask=needs_mask)

    if buffers == 2:
        logits_spec = pl.BlockSpec((tn, v), idx_map)
    else:
        logits_spec = pl.BlockSpec((tn, v), idx_map,
                                   pipeline_mode=pl.Buffered(buffers))

    res = pl.pallas_call(
        kernel,
        out_shape=jax.ShapeDtypeStruct((1, 128 * n_par), jnp.float32),
        grid_spec=pltpu.PrefetchScalarGridSpec(
            num_scalar_prefetch=0,
            grid=(n_par, bpp),
            in_specs=[
                pl.BlockSpec((tn, 2), idx_map),   # packed (input_id, output_id)
                logits_spec,                      # logits, native dtype
            ],
            out_specs=pl.BlockSpec((1, 128), lambda par, j: (0, par)),
            scratch_shapes=[pltpu.VMEM((tn, 1), jnp.float32)],  # per-row accumulator
        ),
        compiler_params=pltpu.CompilerParams(
            dimension_semantics=("parallel", "arbitrary"),
            vmem_limit_bytes=vmem_limit),
    )(ids, logits2)

    partials = res.reshape(n_par, 128)[:, 0]
    total = jnp.sum(partials)
    if size_average:
        total = total / jnp.float32(n)
    return total


# --------------------------------------------------------------------------- #
# Reference + self-test
# --------------------------------------------------------------------------- #
def _reference(logits, input_id, output_id, p=1.0, size_average=True):
    """Pure-JAX reference (mirrors the PyTorch forward)."""
    prob = jax.nn.log_softmax(logits.astype(jnp.float32), axis=-1)
    nll = -jnp.take_along_axis(prob, output_id[..., None], axis=-1)[..., 0]
    correct = (input_id == output_id).astype(jnp.float32)
    error = (input_id != output_id).astype(jnp.float32)
    loss = correct * nll + p * error * nll
    return loss.mean() if size_average else loss.sum()


if __name__ == "__main__":
    key = jax.random.PRNGKey(0)

    # --- Test 1: small f32, p != 1, mean reduction (auto tile) ---------------
    k1, k2, k3 = jax.random.split(key, 3)
    B, S, V = 2, 8, 32
    P = 2.0
    logits = jax.random.normal(k1, (B, S, V), dtype=jnp.float32)
    input_id = jax.random.randint(k2, (B, S), 0, V, dtype=jnp.int32)
    output_id = jax.random.randint(k3, (B, S), 0, V, dtype=jnp.int32)
    output_id = output_id.at[:, ::2].set(input_id[:, ::2])   # exercise both masks

    loss = jax.block_until_ready(combine_loss(logits, input_id, output_id,
                                              p=P, size_average=True))
    ref = _reference(logits, input_id, output_id, p=P, size_average=True)
    np.testing.assert_allclose(np.asarray(loss), np.asarray(ref),
                               rtol=1e-5, atol=1e-5)

    # --- Test 2: bf16 logits, N not divisible by tile, p == 1, sum reduction -
    k4, k5, k6 = jax.random.split(jax.random.PRNGKey(1), 3)
    B2, S2, V2 = 3, 25, 64                     # N = 75 -> boundary block + mask
    logits2 = jax.random.normal(k4, (B2, S2, V2), dtype=jnp.float32).astype(jnp.bfloat16)
    in2 = jax.random.randint(k5, (B2, S2), 0, V2, dtype=jnp.int32)
    out2 = jax.random.randint(k6, (B2, S2), 0, V2, dtype=jnp.int32)
    loss2 = jax.block_until_ready(combine_loss(logits2, in2, out2,
                                               p=1.0, size_average=False, tn=32))
    ref2 = _reference(logits2, in2, out2, p=1.0, size_average=False)
    np.testing.assert_allclose(np.asarray(loss2), np.asarray(ref2),
                               rtol=1e-4, atol=1e-3)

    # --- Test 3: multi-block grid, p != 1, mean ------------------------------
    k7, k8, k9 = jax.random.split(jax.random.PRNGKey(2), 3)
    B3, S3, V3 = 2, 64, 48                     # N = 128, tn=32 -> 4 blocks
    logits3 = jax.random.normal(k7, (B3, S3, V3), dtype=jnp.float32)
    in3 = jax.random.randint(k8, (B3, S3), 0, V3, dtype=jnp.int32)
    out3 = jax.random.randint(k9, (B3, S3), 0, V3, dtype=jnp.int32)
    out3 = out3.at[:, ::3].set(in3[:, ::3])
    loss3 = jax.block_until_ready(combine_loss(logits3, in3, out3,
                                               p=2.0, size_average=True, tn=32))
    ref3 = _reference(logits3, in3, out3, p=2.0, size_average=True)
    np.testing.assert_allclose(np.asarray(loss3), np.asarray(ref3),
                               rtol=1e-5, atol=1e-5)

    # --- Test 4: forced 2-way split with ODD block count (padded grid + clamp)
    k10, k11, k12 = jax.random.split(jax.random.PRNGKey(3), 3)
    B4, S4, V4 = 2, 40, 48                     # N = 80, tn=32 -> 3 blocks -> pad to 4
    logits4 = jax.random.normal(k10, (B4, S4, V4), dtype=jnp.float32)
    in4 = jax.random.randint(k11, (B4, S4), 0, V4, dtype=jnp.int32)
    out4 = jax.random.randint(k12, (B4, S4), 0, V4, dtype=jnp.int32)
    loss4 = jax.block_until_ready(combine_loss(logits4, in4, out4,
                                               p=3.0, size_average=True, tn=32,
                                               force_n_par=2))
    ref4 = _reference(logits4, in4, out4, p=3.0, size_average=True)
    np.testing.assert_allclose(np.asarray(loss4), np.asarray(ref4),
                               rtol=1e-5, atol=1e-5)

    print("KERNEL_OK")
</pallas_src>

<mosaic_0001>
module attributes {stable_mosaic.version = 11 : i64} {
  func.func @_combine_loss_kernel(%arg0: i32, %arg1: i32, %arg2: memref<16x2xi32, #tpu.memory_space<vmem>>, %arg3: memref<16x32xf32, #tpu.memory_space<vmem>>, %arg4: memref<1x128xf32, #tpu.memory_space<vmem>>, %arg5: memref<16x1xf32, #tpu.memory_space<vmem>>) attributes {dimension_semantics = [#tpu.dimension_semantics<parallel>, #tpu.dimension_semantics<arbitrary>], iteration_bounds = array<i64: 1, 1>, scalar_prefetch = 0 : i64, scratch_operands = 1 : i64, tpu.core_type = #tpu.core_type<tc>, window_params = [{transform_indices = @transform_0, window_bounds = array<i64: 16, 2>}, {transform_indices = @transform_1, window_bounds = array<i64: 16, 32>}, {transform_indices = @transform_2, window_bounds = array<i64: 1, 128>}]} {
    %c0_i32 = arith.constant 0 : i32
    %0 = arith.cmpi eq, %arg1, %c0_i32 : i32
    %1 = arith.extui %0 : i1 to i32
    %c0_i32_0 = arith.constant 0 : i32
    %2 = arith.cmpi ne, %1, %c0_i32_0 : i32
    scf.if %2 {
      %cst_15 = arith.constant 0.000000e+00 : f32
      %36 = vector.broadcast %cst_15 : f32 to vector<16x1xf32>
      %c0_16 = arith.constant 0 : index
      %c0_17 = arith.constant 0 : index
      %37 = vector.load %arg5[%c0_16, %c0_17] : memref<16x1xf32, #tpu.memory_space<vmem>>, vector<16x1xf32>
      tpu.vector_store %arg5[%c0_16, %c0_17], %36 {strides = array<i32>} : memref<16x1xf32, #tpu.memory_space<vmem>>, vector<16x1xf32>,
    } else {
    }
    %c0 = arith.constant 0 : index
    %c0_1 = arith.constant 0 : index
    %3 = vector.load %arg3[%c0, %c0_1] : memref<16x32xf32, #tpu.memory_space<vmem>>, vector<16x32xf32>
    %c0_2 = arith.constant 0 : index
    %c0_3 = arith.constant 0 : index
    %4 = vector.load %arg2[%c0_2, %c0_3] : memref<16x2xi32, #tpu.memory_space<vmem>>, vector<16x2xi32>
    %5 = vector.extract_strided_slice %4 {offsets = [0, 1], sizes = [16, 1], strides = [1, 1]} : vector<16x2xi32> to vector<16x1xi32>
    %cst = arith.constant dense<0xFF800000> : vector<16xf32>
    %6 = vector.multi_reduction <maximumf>, %3, %cst [1] : vector<16x32xf32> to vector<16xf32>
    %7 = vector.shape_cast %6 : vector<16xf32> to vector<16x1xf32>
    %8 = tpu.iota {dimensions = array<i32: 1>} : vector<16x32xi32>
    %9 = vector.broadcast %5 : vector<16x1xi32> to vector<16x32xi32>
    %10 = arith.cmpi eq, %8, %9 : vector<16x32xi32>
    %c0_i32_4 = arith.constant 0 : i32
    %11 = arith.sitofp %c0_i32_4 : i32 to f32
    %12 = vector.broadcast %11 : f32 to vector<16x32xf32>
    %13 = arith.select %10, %3, %12 : vector<16x32xi1>, vector<16x32xf32>
    %cst_5 = arith.constant dense<0.000000e+00> : vector<16xf32>
    %14 = vector.multi_reduction <add>, %13, %cst_5 [1] : vector<16x32xf32> to vector<16xf32>
    %15 = vector.shape_cast %14 : vector<16xf32> to vector<16x1xf32>
    %16 = vector.broadcast %7 : vector<16x1xf32> to vector<16x32xf32>
    %17 = arith.subf %3, %16 : vector<16x32xf32>
    %18 = math.exp %17 : vector<16x32xf32>
    %cst_6 = arith.constant dense<0.000000e+00> : vector<16xf32>
    %19 = vector.multi_reduction <add>, %18, %cst_6 [1] : vector<16x32xf32> to vector<16xf32>
    %20 = vector.shape_cast %19 : vector<16xf32> to vector<16x1xf32>
    %21 = math.log %20 : vector<16x1xf32>
    %22 = arith.addf %21, %7 : vector<16x1xf32>
    %23 = arith.subf %22, %15 : vector<16x1xf32>
    %24 = vector.extract_strided_slice %4 {offsets = [0, 0], sizes = [16, 1], strides = [1, 1]} : vector<16x2xi32> to vector<16x1xi32>
    %25 = arith.cmpi eq, %24, %5 : vector<16x1xi32>
    %cst_7 = arith.constant 1.000000e+00 : f32
    %cst_8 = arith.constant 2.000000e+00 : f32
    %26 = vector.broadcast %cst_7 : f32 to vector<16x1xf32>
    %27 = vector.broadcast %cst_8 : f32 to vector<16x1xf32>
    %28 = arith.select %25, %26, %27 : vector<16x1xi1>, vector<16x1xf32>
    %29 = arith.mulf %28, %23 : vector<16x1xf32>
    %c0_9 = arith.constant 0 : index
    %c0_10 = arith.constant 0 : index
    %30 = vector.load %arg5[%c0_9, %c0_10] : memref<16x1xf32, #tpu.memory_space<vmem>>, vector<16x1xf32>
    %31 = arith.addf %30, %29 : vector<16x1xf32>
    %c0_11 = arith.constant 0 : index
    %c0_12 = arith.constant 0 : index
    %32 = vector.load %arg5[%c0_11, %c0_12] : memref<16x1xf32, #tpu.memory_space<vmem>>, vector<16x1xf32>
    tpu.vector_store %arg5[%c0_11, %c0_12], %31 {strides = array<i32>} : memref<16x1xf32, #tpu.memory_space<vmem>>, vector<16x1xf32>,
    %c0_i32_13 = arith.constant 0 : i32
    %33 = arith.cmpi eq, %arg1, %c0_i32_13 : i32
    %34 = arith.extui %33 : i1 to i32
    %c0_i32_14 = arith.constant 0 : i32
    %35 = arith.cmpi ne, %34, %c0_i32_14 : i32
    scf.if %35 {
      %c0_15 = arith.constant 0 : index
      %c0_16 = arith.constant 0 : index
      %36 = vector.load %arg5[%c0_15, %c0_16] : memref<16x1xf32, #tpu.memory_space<vmem>>, vector<16x1xf32>
      %cst_17 = arith.constant dense<0.000000e+00> : vector<1xf32>
      %37 = vector.multi_reduction <add>, %36, %cst_17 [0] : vector<16x1xf32> to vector<1xf32>
      %38 = vector.shape_cast %37 : vector<1xf32> to vector<1x1xf32>
      %39 = vector.shape_cast %38 : vector<1x1xf32> to vector<1x1xf32>
      %40 = vector.broadcast %39 : vector<1x1xf32> to vector<1x128xf32>
      %c0_18 = arith.constant 0 : index
      %c0_19 = arith.constant 0 : index
      %41 = vector.load %arg4[%c0_18, %c0_19] : memref<1x128xf32, #tpu.memory_space<vmem>>, vector<1x128xf32>
      tpu.vector_store %arg4[%c0_18, %c0_19], %40 {strides = array<i32>} : memref<1x128xf32, #tpu.memory_space<vmem>>, vector<1x128xf32>,
    } else {
    }
    return
  }
  func.func @transform_0(%arg0: i32, %arg1: i32) -> (i32, i32) {
    %c1_i32 = arith.constant 1 : i32
    %0 = arith.muli %arg0, %c1_i32 : i32
    %1 = arith.addi %0, %arg1 : i32
    %c0_i32 = arith.constant 0 : i32
    %c0_i32_0 = arith.constant 0 : i32
    return %1, %c0_i32 : i32, i32
  }
  func.func @transform_1(%arg0: i32, %arg1: i32) -> (i32, i32) {
    %c1_i32 = arith.constant 1 : i32
    %0 = arith.muli %arg0, %c1_i32 : i32
    %1 = arith.addi %0, %arg1 : i32
    %c0_i32 = arith.constant 0 : i32
    %c0_i32_0 = arith.constant 0 : i32
    return %1, %c0_i32 : i32, i32
  }
  func.func @transform_2(%arg0: i32, %arg1: i32) -> (i32, i32) {
    %c0_i32 = arith.constant 0 : i32
    %c0_i32_0 = arith.constant 0 : i32
    return %c0_i32, %arg0 : i32, i32
  }
}

</mosaic_0001>

<bundles_post_ra>
// kernel: tpu_custom_call.1
= control target key start
LH: loop header
LB: loop body
LE: loop exit
PB: predicated region body
PF: predicated region fallthrough
CT: control target
= control target key end

     0   :  { %vm67_vm0 = vcmask 261120   ;;  %v216_v4 = vmov 1   ;;  %s273_s0 = inlined_call_operand.vmem [shape: s32[16,2], index: 0, kind: input, shape index: {}]   ;;  %s274_s1 = inlined_call_operand.vmem [shape: f32[16,32], index: 1, kind: input, shape index: {}]   ;;  %s275_s2 = inlined_call_operand.hbm [shape: f32[1,128], index: 2, kind: output, shape index: {}]  }
   0x1   :  { %v63_v0 = vld [vmem:[%s274_s1] sm:$0xff]  ;;  %v64_v1 = vld [vmem:[%s274_s1 + $0x8] sm:$0xff]  ;;  %181 = vset.pattern.permute.xlu1 %v216_v4 }
   0x2   :  { %v65_v2 = vld [vmem:[%s273_s0] sm:$0xff]  ;;  %v68_v3 = vsel %vm67_vm0, %v63_v0, -inf }
   0x3   :  { %7 = vsyncpa [#allocation4], 0  ;;  %69 = vmax.xlane.f32.xlu0 %v68_v3  ;;  %77 = vperm.xlu1 %181, %v65_v2   ;;  %v71_v5 = vsel %vm67_vm0, %v64_v1, -inf  ;;  %v66_v6 = vld [vmem:[%s273_s0 + $0x8] sm:$0xff]  ;;  %v74_v11 = vlaneseq  ;;  %vm60_vm3 = vcmask 7168   ;;  %v217_v25 = vmov 0.0  }
   0x4   :  { %61 = vst.msk [vmem:[#allocation2] sm:$0xff] %vm60_vm3, %v217_v25  ;;  %62 = vst.msk [vmem:[#allocation2 + $0x8] sm:$0xff] %vm60_vm3, %v217_v25  ;;  %s218_s0 = smov 127   ;;  %v219_v26 = vmov 0   ;;  %v220_v36 = vmov 2.0   ;;  %s221_s1 = smov [#allocation3]  }
   0x5   :  { %v75_v15 = vand.u32 127, %v74_v11  ;;  %183 = vset.pattern.permute.xlu0 %v219_v26  ;;  %s155_s17 = sshll.u32 %s221_s1, 4  ;;  %s156_s17 = int_to_ptr.vmem [resolvable:$true] %s155_s17 }
   0x6   :  { %s192_s18 = scalar_lea.vmem %s156_s17, 16  ;;  %s196_s19 = scalar_lea.vmem %s156_s17, 32 }
   0x7   :  { %72 = vmax.xlane.f32.xlu0 %v71_v5  ;;  %80 = vperm.xlu1 %181, %v66_v6   ;;  %p193_p0 = scmp.ne.s32.totalorder %s156_s17, %s192_s18  ;;  %p197_p1 = scmp.lt.s32.totalorder %s156_s17, %s156_s17 }
   0x8   :  { %p198_p2 = scmp.lt.s32.totalorder %s196_s19, %s192_s18 }
   0xa   :  { %p199_p3 = por %p198_p2, %p197_p1 }
   0xb   :  { %182 = vset.pattern.permute.xlu1 %v219_v26  ;;  %v122_v41 = vld [vmem:[#allocation2] sm:$0xff]  ;;  %v123_v47 = vld [vmem:[#allocation2 + $0x8] sm:$0xff] }
   0xc   :  { %p200_p4 = pnand %p199_p3, %p193_p0 }
  0x82   :  { %v78_v14 = vpop.permute.xlu1 %77 }
  0x83   :  { %vm82_vm1 = vcmp.eq.s32.totalorder %v75_v15, %v78_v14 }
  0x84   :  { %v84_v18 = vsel %vm82_vm1, %v63_v0, 0.0 }
  0x85   :  { %v86_v20 = vsel %vm67_vm0, %v84_v18, 0.0 }
  0x86   :  { %v81_v16 = vpop.permute.xlu1 %80 }
  0x87   :  { %vm83_vm2 = vcmp.eq.s32.totalorder %v75_v15, %v81_v16 }
  0x88   :  { %v85_v22 = vsel %vm83_vm2, %v64_v1, 0.0 }
  0x89   :  { %v89_v24 = vsel %vm67_vm0, %v85_v22, 0.0 }
  0x90   :  { %v70_v7 = vpop.xlane.xlu0 %69 }
  0x91   :  { %v92_v8 = vsub.f32 %v63_v0, %v70_v7 }
  0x93   :  { %v94_v9 = vmul.f32 1.442695, %v92_v8 }
  0x94   :  { %v73_v10 = vpop.xlane.xlu0 %72 }
  0x95   :  { %184 = vpow2.f32 %v94_v9  ;;  %v93_v12 = vsub.f32 %v64_v1, %v73_v10 }
  0x97   :  { %v96_v13 = vmul.f32 1.442695, %v93_v12 }
  0x99   :  { %186 = vpow2.f32 %v96_v13 }
  0x9f   :  { %v185_v17 = vpop.eup %184 }
  0xa0   :  { %v98_v19 = vsel %vm67_vm0, %v185_v17, 0.0 }
  0xa1   :  { %99 = vadd.xlane.f32.xlu0 %v98_v19 }
  0xa3   :  { %v187_v21 = vpop.eup %186 }
  0xa4   :  { %v101_v23 = vsel %vm67_vm0, %v187_v21, 0.0 }
  0xa5   :  { %87 = vadd.xlane.f32.xlu0 %v86_v20  ;;  %102 = vadd.xlane.f32.xlu1 %v101_v23 }
  0xa9   :  { %90 = vadd.xlane.f32.xlu0 %v89_v24 }
  0xbf   :  { %112 = vrot.lane.b32.xlu0 %v65_v2, %s218_s0 }
  0xc3   :  { %114 = vrot.lane.b32.xlu0 %v66_v6, %s218_s0 }
 0x12e   :  { %v100_v27 = vpop.xlane.xlu0 %99 }
 0x12f   :  { %188 = vlog2.f32 %v100_v27 }
 0x132   :  { %v103_v28 = vpop.xlane.xlu1 %102  ;;  %v88_v29 = vpop.xlane.xlu0 %87 }
 0x133   :  { %190 = vlog2.f32 %v103_v28 }
 0x136   :  { %v91_v30 = vpop.xlane.xlu0 %90 }
 0x139   :  { %v189_v31 = vpop.eup %188 }
 0x13a   :  { %v105_v32 = vmul.f32 0.6931472, %v189_v31  ;;  %v113_v33 = vpop.permute.xlu0 %112 }
 0x13b   :  { %vm116_vm4 = vcmp.eq.s32.totalorder %v65_v2, %v113_v33 }
 0x13c   :  { %v108_v34 = vadd.f32 %v105_v32, %v70_v7  ;;  %v118_v37 = vsel %vm116_vm4, 1.0, %v220_v36 }
 0x13d   :  { %v191_v35 = vpop.eup %190 }
 0x13e   :  { %v107_v38 = vmul.f32 0.6931472, %v191_v35  ;;  %v110_v39 = vsub.f32 %v108_v34, %v88_v29  ;;  %v115_v40 = vpop.permute.xlu0 %114 }
 0x13f   :  { %vm117_vm5 = vcmp.eq.s32.totalorder %v66_v6, %v115_v40 }
 0x140   :  { %v109_v42 = vadd.f32 %v107_v38, %v73_v10  ;;  %v120_v43 = vmul.f32 %v118_v37, %v110_v39  ;;  %v119_v44 = vsel %vm117_vm5, 1.0, %v220_v36 }
 0x142   :  { %v111_v45 = vsub.f32 %v109_v42, %v91_v30  ;;  %v124_v46 = vadd.f32 %v122_v41, %v120_v43 }
 0x144   :  { %127 = vst.msk [vmem:[#allocation2] sm:$0xff] %vm60_vm3, %v124_v46  ;;  %v121_v48 = vmul.f32 %v119_v44, %v111_v45 }
 0x146   :  { %v125_v49 = vadd.f32 %v123_v47, %v121_v48 }
 0x148   :  { %128 = vst.msk [vmem:[#allocation2 + $0x8] sm:$0xff] %vm60_vm3, %v125_v49 }
 0x14b   :  { %v132_v50 = vld [vmem:[#allocation2] sm:$0xff] }
 0x14c   :  { %v134_v52 = vsel %vm60_vm3, %v132_v50, 0.0 }
 0x14f   :  { %v133_v51 = vld [vmem:[#allocation2 + $0x8] sm:$0xff] }
 0x150   :  { %v135_v53 = vsel %vm60_vm3, %v133_v51, 0.0 }
 0x151   :  { %v136_v54 = vadd.f32 %v135_v53, %v134_v52 }
 0x153   :  { %v137_v55 = vrot.slane %v136_v54, 4 }
 0x155   :  { %v138_v56 = vadd.f32 %v137_v55, %v136_v54 }
 0x157   :  { %v139_v57 = vrot.slane %v138_v56, 2 }
 0x159   :  { %v140_v58 = vadd.f32 %v139_v57, %v138_v56 }
 0x15b   :  { %v141_v59 = vrot.slane %v140_v58, 1 }
 0x15d   :  { %v142_v60 = vadd.f32 %v141_v59, %v140_v58 }
 0x15f   :  { %145 = vperm.xlu1 %182, %v142_v60  }
 0x1de   :  { %v146_v61 = vpop.permute.xlu1 %145 }
 0x1df   :  { %148 = vst [vmem:[#allocation3] sm:$0x1] %v146_v61 }
 0x1e0   :  { %203 = shalt.err (!%p200_p4)
}
 0x1e1   :  { %s204_s22 = scalar_lea.hbm %s275_s2, 16 }
 0x1e2   :  { %p205_p5 = scmp.ne.s32.totalorder %s275_s2, %s204_s22  ;;  %p208_p6 = scmp.lt.u32.totalorder %s204_s22, %s275_s2 }
 0x1e4   :  { %p210_p7 = pnand %p208_p6, %p205_p5 }
 0x1e6   :  { %213 = shalt.err (!%p210_p7)
}
 0x1e7   :  { %158 = dma.vmem_to_hbm [thread:$0]  %s156_s17, 16, %s275_s2, [#allocation4]  }
 0x1e8   :  { %214 = dma.done.wait [#allocation4], 16  }
 0x1e9   :  { %215 = vsyncadd [#allocation4], 4294967280 }
 0x1ea   :  { %162 = vsyncpa [#allocation4], 1 }

</bundles_post_ra>
